<compile_context>
chip_gen: v6e
topology: v6e:2x2x1
jax: 0.10.0
libtpu: 0.0.40
codegen_flags: <defaults>
</compile_context>

<pallas_src>
import functools

import jax
import jax.numpy as jnp
from jax.experimental import pallas as pl
from jax.experimental.pallas import tpu as pltpu


def _round_up(n, m):
    return ((n + m - 1) // m) * m


def _pick_batch_tile(B, cap):
    """Batch tile: multiple of 128 under `cap` that minimizes padding waste,
    preferring multiples of 1024 (full 8-sublane chain vregs) and larger tiles
    (fewer grid steps); large single-tile batches are split in two so both v7x
    TensorCores get work."""
    cap = max(128, (cap // 128) * 128)
    b_ceil = _round_up(B, 128)
    if b_ceil <= cap:
        if b_ceil >= 2048 and b_ceil % 256 == 0:
            return b_ceil // 2          # >= 2 tiles for the 2 TensorCores on v7x
        return b_ceil
    best_bt, best_key = 128, None
    for bt in range(128, cap + 1, 128):
        pad = _round_up(B, bt) - B
        key = (pad, 0 if bt % 1024 == 0 else 1, -bt)
        if best_key is None or key < best_key:
            best_key, best_bt = key, bt
    return best_bt


def _mps_kernel(x_ref, c_ref, ct_ref, o_ref, *, HN, VBD):
    """Fused MPS contraction for one batch tile.

    x_ref : (BT, W*P)    batch rows, natural input layout (no wrapper transpose)
    c_ref : (W*Q, W*P)   block-diagonal per-site coefficients for BOTH chains
    ct_ref: (O*T, Q)     center cores, row o*T+t, col p*VBD+l
    o_ref : (O*T, BT)    lane-dense output slab
    """
    Q = VBD * VBD
    BT = x_ref.shape[0]
    SG = BT // 128                      # 128-lane batch groups

    # (1) ONE fused MXU matmul: every per-site (VBD x VBD) matrix of both chains.
    #     m[(g*VBD + i)*VBD + j, b],  g = global site index (left sites, then right).
    m = jnp.dot(c_ref[...], x_ref[...].T, preferred_element_type=jnp.float32)

    # (2) Relayout batch lanes into (sublane, lane): every chain temporary becomes
    #     a dense (SG, 128) block instead of a 1-sublane (1, BT) row.
    m = m.reshape(m.shape[0], SG, 128)          # canonical minor split (.., S*128)->(.., S, 128)
    m = m.reshape(2 * HN, VBD, VBD, SG, 128)    # leading-dims split (free)

    def site(g):
        return [[m[g, i, j] for j in range(VBD)] for i in range(VBD)]

    def chain(g0):
        # Ordered product of the HN per-site matrices of one half-chain.
        # Every entry is a dense (SG, 128) block -> pure VPU mul/add.
        # TODO(synk): for large HN convert to lax.fori_loop over a per-site VMEM
        #             table to bound code size / live vregs.
        prod = site(g0)
        for w in range(1, HN):
            nxt = site(g0 + w)
            prod = [[sum(prod[i][k] * nxt[k][j] for k in range(VBD))
                     for j in range(VBD)] for i in range(VBD)]
        return prod

    L = chain(0)        # left  half-chain: sites 0 .. HN-1
    R = chain(HN)       # right half-chain: sites HN .. 2*HN-1

    # (3) Close the ring: G[p*VBD + l, b] = sum_i L[i][p] * R[l][i]
    G = jnp.stack([sum(L[i][p] * R[l][i] for i in range(VBD))
                   for p in range(VBD) for l in range(VBD)], axis=0)  # (Q, SG, 128)
    G = G.reshape(Q, BT).astype(ct_ref.dtype)

    # (4) out[o*T + t, b] = sum_q ct[o*T + t, q] * G[q, b]
    #     K-starved by construction (K = VBD^2); cost is M*N fill, so keep
    #     operands narrow (bf16) and the output lane-dense.
    o_ref[...] = jnp.dot(ct_ref[...], G,
                         preferred_element_type=jnp.float32).astype(o_ref.dtype)


def mps_linear_pallas(x, left_t, rigt_t, cent_t, *,
                      batch_tile=4096,
                      mxu_dtype=jnp.bfloat16,
                      vmem_budget_bytes=40 * (1 << 20)):
    """MPSLinear forward.  x: (B, in_features, ipb) -> (B, out_features, opb).

    vmem_budget_bytes: per-tile VMEM budget used to cap the batch tile.  The
    default (40 MiB, limit 56 MiB) is safe on v7x (64 MiB physical); on v5e/v6e
    (128 MiB physical) it can be raised toward ~80-96 MiB for bigger tiles.
    """
    B, W, P = x.shape
    HN, VBD, _, _ = left_t.shape
    RN = rigt_t.shape[0]
    O, _, _, T = cent_t.shape
    # The PyTorch forward contracts rigt_tensors against the LAST hn sites, so it
    # is only consistent when right_num == hn (even in_features, label 'center').
    assert RN == HN, "requires right_num == hn (even in_features, label_position='center')"
    assert W == 2 * HN

    Q = VBD * VBD
    WP = W * P
    OT = O * T
    f32 = jnp.float32
    mxu_bytes = jnp.dtype(mxu_dtype).itemsize

    # ---- batch tile: VMEM-budgeted, minimal padding, >=2 tiles when large ----
    lanes_x = _round_up(WP, 128)
    const_bytes = 2 * (_round_up(W * Q, 8) * lanes_x + _round_up(OT, 8) * 128) * mxu_bytes
    per_col = (2 * lanes_x * mxu_bytes                     # double-buffered x tile
               + 2 * _round_up(OT, 8) * 4                  # double-buffered out tile (f32)
               + (2 * W * Q + 4 * Q + _round_up(OT, 8)) * 4)  # in-kernel f32 values
    cap = max(128, (vmem_budget_bytes - const_bytes) // per_col)
    BT = _pick_batch_tile(B, min(int(cap), int(batch_tile)))
    B_pad = _round_up(B, BT)
    vmem_limit = int(min(max(vmem_budget_bytes + (16 << 20), 32 << 20), 120 << 20))

    # ---- x stays in natural (rows = batch) layout: no HBM transpose pass -----
    x2 = x.reshape(B, WP).astype(mxu_dtype)
    if B_pad != B:
        x2 = jnp.pad(x2, ((0, B_pad - B), (0, 0)))

    # ---- one fused block-diagonal coefficient matrix for BOTH half-chains ----
    #   c_all[(g*VBD+i)*VBD+j, v*P+p] = delta(g, v) * core_g[i, j, p]
    cores = jnp.concatenate([left_t, rigt_t], axis=0)              # (W, VBD, VBD, P)
    c = cores.reshape(W, Q, P).astype(f32)
    eye = jnp.eye(W, dtype=f32)
    c_all = jnp.einsum('wqp,wv->wqvp', c, eye).reshape(W * Q, W * P).astype(mxu_dtype)
    # center cores: ct[o, p, l, t] -> ct_mat[o*T + t, p*VBD + l]
    ct_mat = jnp.transpose(cent_t, (0, 3, 1, 2)).reshape(OT, Q).astype(mxu_dtype)

    kernel = functools.partial(_mps_kernel, HN=HN, VBD=VBD)

    out_t = pl.pallas_call(
        kernel,
        out_shape=jax.ShapeDtypeStruct((OT, B_pad), f32),
        grid_spec=pltpu.PrefetchScalarGridSpec(
            num_scalar_prefetch=0,
            grid=(B_pad // BT,),
            in_specs=[
                pl.BlockSpec((BT, WP), lambda b: (b, 0)),          # x tile (batch rows)
                pl.BlockSpec((W * Q, W * P), lambda b: (0, 0)),    # fused coefficients
                pl.BlockSpec((OT, Q), lambda b: (0, 0)),           # center matrix
            ],
            out_specs=pl.BlockSpec((OT, BT), lambda b: (0, b)),
        ),
        compiler_params=pltpu.CompilerParams(
            dimension_semantics=("parallel",),     # shard batch tiles across TCs (v7x)
            vmem_limit_bytes=vmem_limit,
        ),
    )(x2, c_all, ct_mat)

    # lane-dense (O*T, B_pad) slab -> PyTorch convention (B, O, T)
    # TODO(synk): when O*T % 128 == 0, store (BT, O*T) in-kernel to drop this transpose.
    return out_t[:, :B].T.reshape(B, O, T)


def mps_reference(x, lt, rt, ct, hn):
    """Pure-JAX transliteration of the PyTorch forward (for validation)."""
    left = jnp.einsum('wijp,nwp->wnij', lt, x[:, :hn])
    rigt = jnp.einsum('wijp,nwp->wnij', rt, x[:, -hn:])

    def chain(t):
        out = t[0]
        for w in range(1, t.shape[0]):
            out = jnp.einsum('bik,bkj->bij', out, t[w])
        return out

    L = chain(left)
    R = chain(rigt)
    return jnp.einsum('bip,oplt,bli->bot', L, ct, R)


def _check(name, out, ref, rel):
    err = float(jnp.max(jnp.abs(out - ref)))
    scale = float(jnp.max(jnp.abs(ref))) + 1e-30
    assert err <= rel * scale + 1e-6, f"{name}: err={err:.3e} scale={scale:.3e}"


if __name__ == "__main__":
    def make_params(key, in_features, out_features, ipb, opb, vbd, init_std=0.1):
        # module default init_std=1e-10 is numerically degenerate; shapes identical
        kl, kr, kc = jax.random.split(key, 3)
        hn = in_features // 2                       # label_position='center'
        eye_ip = jnp.tile(jnp.eye(vbd, dtype=jnp.float32)[:, :, None], (1, 1, ipb))
        eye_op = jnp.tile(jnp.eye(vbd, dtype=jnp.float32)[:, :, None], (1, 1, opb))
        lt = init_std * jax.random.normal(kl, (hn, vbd, vbd, ipb), jnp.float32) + eye_ip
        rt = init_std * jax.random.normal(kr, (in_features - hn, vbd, vbd, ipb), jnp.float32) + eye_ip
        ct = init_std * jax.random.normal(kc, (out_features, vbd, vbd, opb), jnp.float32) + eye_op
        return lt, rt, ct, hn

    key = jax.random.PRNGKey(0)
    kp, kx1, kx2 = jax.random.split(key, 3)

    B, in_f, out_f, ipb, opb, vbd = 2, 8, 32, 2, 1, 2
    lt, rt, ct, hn = make_params(kp, in_f, out_f, ipb, opb, vbd)
    x = jax.random.normal(kx1, (B, in_f, ipb), jnp.float32)

    # --- test 1: small shapes, f32 MXU path (tight check) ---------------------
    run_f32 = jax.jit(functools.partial(mps_linear_pallas, mxu_dtype=jnp.float32))
    out = jax.block_until_ready(run_f32(x, lt, rt, ct))
    ref = mps_reference(x, lt, rt, ct, hn)
    assert out.shape == (B, out_f, opb), out.shape
    _check("small/f32", out, ref, 1e-4)

    # --- test 2: small shapes, default bf16 MXU path (vs bf16-quantized ref) --
    q = lambda a: a.astype(jnp.bfloat16).astype(jnp.float32)
    run_bf16 = jax.jit(mps_linear_pallas)
    out = jax.block_until_ready(run_bf16(x, lt, rt, ct))
    ref_q = mps_reference(q(x), q(lt), q(rt), q(ct), hn)
    _check("small/bf16", out, ref_q, 1e-2)

    # --- test 3: larger batch -> multi-tile grid, padded batch, dense sublanes -
    B2 = 4000
    x2 = jax.random.normal(kx2, (B2, in_f, ipb), jnp.float32)
    out2 = jax.block_until_ready(run_bf16(x2, lt, rt, ct))
    ref2 = mps_reference(q(x2), q(lt), q(rt), q(ct), hn)
    assert out2.shape == (B2, out_f, opb), out2.shape
    _check("batch4000/bf16", out2, ref2, 1e-2)

    print("KERNEL_OK")
</pallas_src>

<mosaic_0001>
module attributes {stable_mosaic.version = 11 : i64} {
  func.func @_mps_kernel(%arg0: i32, %arg1: memref<128x16xf32, #tpu.memory_space<vmem>>, %arg2: memref<32x16xf32, #tpu.memory_space<vmem>>, %arg3: memref<32x4xf32, #tpu.memory_space<vmem>>, %arg4: memref<32x128xf32, #tpu.memory_space<vmem>>) attributes {dimension_semantics = [#tpu.dimension_semantics<parallel>], iteration_bounds = array<i64: 1>, scalar_prefetch = 0 : i64, scratch_operands = 0 : i64, tpu.core_type = #tpu.core_type<tc>, window_params = [{transform_indices = @transform_0, window_bounds = array<i64: 128, 16>}, {pipeline_mode = #tpu.pipeline_mode<synchronous>, transform_indices = @transform_1, window_bounds = array<i64: 32, 16>}, {pipeline_mode = #tpu.pipeline_mode<synchronous>, transform_indices = @transform_2, window_bounds = array<i64: 32, 4>}, {transform_indices = @transform_3, window_bounds = array<i64: 32, 128>}]} {
    %c0 = arith.constant 0 : index
    %c0_0 = arith.constant 0 : index
    %0 = vector.load %arg2[%c0, %c0_0] : memref<32x16xf32, #tpu.memory_space<vmem>>, vector<32x16xf32>
    %c0_1 = arith.constant 0 : index
    %c0_2 = arith.constant 0 : index
    %1 = vector.load %arg1[%c0_1, %c0_2] : memref<128x16xf32, #tpu.memory_space<vmem>>, vector<128x16xf32>
    %2 = tpu.transpose %1, [1, 0] : vector<128x16xf32> -> vector<16x128xf32>
    %cst = arith.constant dense<0.000000e+00> : vector<32x128xf32>
    %3 = tpu.matmul %0, %2, %cst {dimension_numbers = #tpu.dot_dimension_numbers<[1], [0], [0], [1], [0, 0, 1, 1], [], []>} : vector<32x16xf32>, vector<16x128xf32>, vector<32x128xf32> -> vector<32x128xf32>
    %4 = vector.shape_cast %3 : vector<32x128xf32> to vector<32x1x128xf32>
    %5 = vector.shape_cast %4 : vector<32x1x128xf32> to vector<8x2x2x1x128xf32>
    %6 = vector.extract_strided_slice %5 {offsets = [0, 0, 0, 0, 0], sizes = [1, 1, 1, 1, 128], strides = [1, 1, 1, 1, 1]} : vector<8x2x2x1x128xf32> to vector<1x1x1x1x128xf32>
    %7 = vector.shape_cast %6 : vector<1x1x1x1x128xf32> to vector<1x128xf32>
    %8 = vector.extract_strided_slice %5 {offsets = [0, 0, 1, 0, 0], sizes = [1, 1, 1, 1, 128], strides = [1, 1, 1, 1, 1]} : vector<8x2x2x1x128xf32> to vector<1x1x1x1x128xf32>
    %9 = vector.shape_cast %8 : vector<1x1x1x1x128xf32> to vector<1x128xf32>
    %10 = vector.extract_strided_slice %5 {offsets = [0, 1, 0, 0, 0], sizes = [1, 1, 1, 1, 128], strides = [1, 1, 1, 1, 1]} : vector<8x2x2x1x128xf32> to vector<1x1x1x1x128xf32>
    %11 = vector.shape_cast %10 : vector<1x1x1x1x128xf32> to vector<1x128xf32>
    %12 = vector.extract_strided_slice %5 {offsets = [0, 1, 1, 0, 0], sizes = [1, 1, 1, 1, 128], strides = [1, 1, 1, 1, 1]} : vector<8x2x2x1x128xf32> to vector<1x1x1x1x128xf32>
    %13 = vector.shape_cast %12 : vector<1x1x1x1x128xf32> to vector<1x128xf32>
    %14 = vector.extract_strided_slice %5 {offsets = [1, 0, 0, 0, 0], sizes = [1, 1, 1, 1, 128], strides = [1, 1, 1, 1, 1]} : vector<8x2x2x1x128xf32> to vector<1x1x1x1x128xf32>
    %15 = vector.shape_cast %14 : vector<1x1x1x1x128xf32> to vector<1x128xf32>
    %16 = vector.extract_strided_slice %5 {offsets = [1, 0, 1, 0, 0], sizes = [1, 1, 1, 1, 128], strides = [1, 1, 1, 1, 1]} : vector<8x2x2x1x128xf32> to vector<1x1x1x1x128xf32>
    %17 = vector.shape_cast %16 : vector<1x1x1x1x128xf32> to vector<1x128xf32>
    %18 = vector.extract_strided_slice %5 {offsets = [1, 1, 0, 0, 0], sizes = [1, 1, 1, 1, 128], strides = [1, 1, 1, 1, 1]} : vector<8x2x2x1x128xf32> to vector<1x1x1x1x128xf32>
    %19 = vector.shape_cast %18 : vector<1x1x1x1x128xf32> to vector<1x128xf32>
    %20 = vector.extract_strided_slice %5 {offsets = [1, 1, 1, 0, 0], sizes = [1, 1, 1, 1, 128], strides = [1, 1, 1, 1, 1]} : vector<8x2x2x1x128xf32> to vector<1x1x1x1x128xf32>
    %21 = vector.shape_cast %20 : vector<1x1x1x1x128xf32> to vector<1x128xf32>
    %22 = arith.mulf %7, %15 : vector<1x128xf32>
    %cst_3 = arith.constant 0.000000e+00 : f32
    %23 = vector.broadcast %cst_3 : f32 to vector<1x128xf32>
    %24 = arith.addf %23, %22 : vector<1x128xf32>
    %25 = arith.mulf %9, %19 : vector<1x128xf32>
    %26 = arith.addf %24, %25 : vector<1x128xf32>
    %27 = arith.mulf %7, %17 : vector<1x128xf32>
    %cst_4 = arith.constant 0.000000e+00 : f32
    %28 = vector.broadcast %cst_4 : f32 to vector<1x128xf32>
    %29 = arith.addf %28, %27 : vector<1x128xf32>
    %30 = arith.mulf %9, %21 : vector<1x128xf32>
    %31 = arith.addf %29, %30 : vector<1x128xf32>
    %32 = arith.mulf %11, %15 : vector<1x128xf32>
    %cst_5 = arith.constant 0.000000e+00 : f32
    %33 = vector.broadcast %cst_5 : f32 to vector<1x128xf32>
    %34 = arith.addf %33, %32 : vector<1x128xf32>
    %35 = arith.mulf %13, %19 : vector<1x128xf32>
    %36 = arith.addf %34, %35 : vector<1x128xf32>
    %37 = arith.mulf %11, %17 : vector<1x128xf32>
    %cst_6 = arith.constant 0.000000e+00 : f32
    %38 = vector.broadcast %cst_6 : f32 to vector<1x128xf32>
    %39 = arith.addf %38, %37 : vector<1x128xf32>
    %40 = arith.mulf %13, %21 : vector<1x128xf32>
    %41 = arith.addf %39, %40 : vector<1x128xf32>
    %42 = vector.extract_strided_slice %5 {offsets = [2, 0, 0, 0, 0], sizes = [1, 1, 1, 1, 128], strides = [1, 1, 1, 1, 1]} : vector<8x2x2x1x128xf32> to vector<1x1x1x1x128xf32>
    %43 = vector.shape_cast %42 : vector<1x1x1x1x128xf32> to vector<1x128xf32>
    %44 = vector.extract_strided_slice %5 {offsets = [2, 0, 1, 0, 0], sizes = [1, 1, 1, 1, 128], strides = [1, 1, 1, 1, 1]} : vector<8x2x2x1x128xf32> to vector<1x1x1x1x128xf32>
    %45 = vector.shape_cast %44 : vector<1x1x1x1x128xf32> to vector<1x128xf32>
    %46 = vector.extract_strided_slice %5 {offsets = [2, 1, 0, 0, 0], sizes = [1, 1, 1, 1, 128], strides = [1, 1, 1, 1, 1]} : vector<8x2x2x1x128xf32> to vector<1x1x1x1x128xf32>
    %47 = vector.shape_cast %46 : vector<1x1x1x1x128xf32> to vector<1x128xf32>
    %48 = vector.extract_strided_slice %5 {offsets = [2, 1, 1, 0, 0], sizes = [1, 1, 1, 1, 128], strides = [1, 1, 1, 1, 1]} : vector<8x2x2x1x128xf32> to vector<1x1x1x1x128xf32>
    %49 = vector.shape_cast %48 : vector<1x1x1x1x128xf32> to vector<1x128xf32>
    %50 = arith.mulf %26, %43 : vector<1x128xf32>
    %cst_7 = arith.constant 0.000000e+00 : f32
    %51 = vector.broadcast %cst_7 : f32 to vector<1x128xf32>
    %52 = arith.addf %51, %50 : vector<1x128xf32>
    %53 = arith.mulf %31, %47 : vector<1x128xf32>
    %54 = arith.addf %52, %53 : vector<1x128xf32>
    %55 = arith.mulf %26, %45 : vector<1x128xf32>
    %cst_8 = arith.constant 0.000000e+00 : f32
    %56 = vector.broadcast %cst_8 : f32 to vector<1x128xf32>
    %57 = arith.addf %56, %55 : vector<1x128xf32>
    %58 = arith.mulf %31, %49 : vector<1x128xf32>
    %59 = arith.addf %57, %58 : vector<1x128xf32>
    %60 = arith.mulf %36, %43 : vector<1x128xf32>
    %cst_9 = arith.constant 0.000000e+00 : f32
    %61 = vector.broadcast %cst_9 : f32 to vector<1x128xf32>
    %62 = arith.addf %61, %60 : vector<1x128xf32>
    %63 = arith.mulf %41, %47 : vector<1x128xf32>
    %64 = arith.addf %62, %63 : vector<1x128xf32>
    %65 = arith.mulf %36, %45 : vector<1x128xf32>
    %cst_10 = arith.constant 0.000000e+00 : f32
    %66 = vector.broadcast %cst_10 : f32 to vector<1x128xf32>
    %67 = arith.addf %66, %65 : vector<1x128xf32>
    %68 = arith.mulf %41, %49 : vector<1x128xf32>
    %69 = arith.addf %67, %68 : vector<1x128xf32>
    %70 = vector.extract_strided_slice %5 {offsets = [3, 0, 0, 0, 0], sizes = [1, 1, 1, 1, 128], strides = [1, 1, 1, 1, 1]} : vector<8x2x2x1x128xf32> to vector<1x1x1x1x128xf32>
    %71 = vector.shape_cast %70 : vector<1x1x1x1x128xf32> to vector<1x128xf32>
    %72 = vector.extract_strided_slice %5 {offsets = [3, 0, 1, 0, 0], sizes = [1, 1, 1, 1, 128], strides = [1, 1, 1, 1, 1]} : vector<8x2x2x1x128xf32> to vector<1x1x1x1x128xf32>
    %73 = vector.shape_cast %72 : vector<1x1x1x1x128xf32> to vector<1x128xf32>
    %74 = vector.extract_strided_slice %5 {offsets = [3, 1, 0, 0, 0], sizes = [1, 1, 1, 1, 128], strides = [1, 1, 1, 1, 1]} : vector<8x2x2x1x128xf32> to vector<1x1x1x1x128xf32>
    %75 = vector.shape_cast %74 : vector<1x1x1x1x128xf32> to vector<1x128xf32>
    %76 = vector.extract_strided_slice %5 {offsets = [3, 1, 1, 0, 0], sizes = [1, 1, 1, 1, 128], strides = [1, 1, 1, 1, 1]} : vector<8x2x2x1x128xf32> to vector<1x1x1x1x128xf32>
    %77 = vector.shape_cast %76 : vector<1x1x1x1x128xf32> to vector<1x128xf32>
    %78 = arith.mulf %54, %71 : vector<1x128xf32>
    %cst_11 = arith.constant 0.000000e+00 : f32
    %79 = vector.broadcast %cst_11 : f32 to vector<1x128xf32>
    %80 = arith.addf %79, %78 : vector<1x128xf32>
    %81 = arith.mulf %59, %75 : vector<1x128xf32>
    %82 = arith.addf %80, %81 : vector<1x128xf32>
    %83 = arith.mulf %54, %73 : vector<1x128xf32>
    %cst_12 = arith.constant 0.000000e+00 : f32
    %84 = vector.broadcast %cst_12 : f32 to vector<1x128xf32>
    %85 = arith.addf %84, %83 : vector<1x128xf32>
    %86 = arith.mulf %59, %77 : vector<1x128xf32>
    %87 = arith.addf %85, %86 : vector<1x128xf32>
    %88 = arith.mulf %64, %71 : vector<1x128xf32>
    %cst_13 = arith.constant 0.000000e+00 : f32
    %89 = vector.broadcast %cst_13 : f32 to vector<1x128xf32>
    %90 = arith.addf %89, %88 : vector<1x128xf32>
    %91 = arith.mulf %69, %75 : vector<1x128xf32>
    %92 = arith.addf %90, %91 : vector<1x128xf32>
    %93 = arith.mulf %64, %73 : vector<1x128xf32>
    %cst_14 = arith.constant 0.000000e+00 : f32
    %94 = vector.broadcast %cst_14 : f32 to vector<1x128xf32>
    %95 = arith.addf %94, %93 : vector<1x128xf32>
    %96 = arith.mulf %69, %77 : vector<1x128xf32>
    %97 = arith.addf %95, %96 : vector<1x128xf32>
    %98 = vector.extract_strided_slice %5 {offsets = [4, 0, 0, 0, 0], sizes = [1, 1, 1, 1, 128], strides = [1, 1, 1, 1, 1]} : vector<8x2x2x1x128xf32> to vector<1x1x1x1x128xf32>
    %99 = vector.shape_cast %98 : vector<1x1x1x1x128xf32> to vector<1x128xf32>
    %100 = vector.extract_strided_slice %5 {offsets = [4, 0, 1, 0, 0], sizes = [1, 1, 1, 1, 128], strides = [1, 1, 1, 1, 1]} : vector<8x2x2x1x128xf32> to vector<1x1x1x1x128xf32>
    %101 = vector.shape_cast %100 : vector<1x1x1x1x128xf32> to vector<1x128xf32>
    %102 = vector.extract_strided_slice %5 {offsets = [4, 1, 0, 0, 0], sizes = [1, 1, 1, 1, 128], strides = [1, 1, 1, 1, 1]} : vector<8x2x2x1x128xf32> to vector<1x1x1x1x128xf32>
    %103 = vector.shape_cast %102 : vector<1x1x1x1x128xf32> to vector<1x128xf32>
    %104 = vector.extract_strided_slice %5 {offsets = [4, 1, 1, 0, 0], sizes = [1, 1, 1, 1, 128], strides = [1, 1, 1, 1, 1]} : vector<8x2x2x1x128xf32> to vector<1x1x1x1x128xf32>
    %105 = vector.shape_cast %104 : vector<1x1x1x1x128xf32> to vector<1x128xf32>
    %106 = vector.extract_strided_slice %5 {offsets = [5, 0, 0, 0, 0], sizes = [1, 1, 1, 1, 128], strides = [1, 1, 1, 1, 1]} : vector<8x2x2x1x128xf32> to vector<1x1x1x1x128xf32>
    %107 = vector.shape_cast %106 : vector<1x1x1x1x128xf32> to vector<1x128xf32>
    %108 = vector.extract_strided_slice %5 {offsets = [5, 0, 1, 0, 0], sizes = [1, 1, 1, 1, 128], strides = [1, 1, 1, 1, 1]} : vector<8x2x2x1x128xf32> to vector<1x1x1x1x128xf32>
    %109 = vector.shape_cast %108 : vector<1x1x1x1x128xf32> to vector<1x128xf32>
    %110 = vector.extract_strided_slice %5 {offsets = [5, 1, 0, 0, 0], sizes = [1, 1, 1, 1, 128], strides = [1, 1, 1, 1, 1]} : vector<8x2x2x1x128xf32> to vector<1x1x1x1x128xf32>
    %111 = vector.shape_cast %110 : vector<1x1x1x1x128xf32> to vector<1x128xf32>
    %112 = vector.extract_strided_slice %5 {offsets = [5, 1, 1, 0, 0], sizes = [1, 1, 1, 1, 128], strides = [1, 1, 1, 1, 1]} : vector<8x2x2x1x128xf32> to vector<1x1x1x1x128xf32>
    %113 = vector.shape_cast %112 : vector<1x1x1x1x128xf32> to vector<1x128xf32>
    %114 = arith.mulf %99, %107 : vector<1x128xf32>
    %cst_15 = arith.constant 0.000000e+00 : f32
    %115 = vector.broadcast %cst_15 : f32 to vector<1x128xf32>
    %116 = arith.addf %115, %114 : vector<1x128xf32>
    %117 = arith.mulf %101, %111 : vector<1x128xf32>
    %118 = arith.addf %116, %117 : vector<1x128xf32>
    %119 = arith.mulf %99, %109 : vector<1x128xf32>
    %cst_16 = arith.constant 0.000000e+00 : f32
    %120 = vector.broadcast %cst_16 : f32 to vector<1x128xf32>
    %121 = arith.addf %120, %119 : vector<1x128xf32>
    %122 = arith.mulf %101, %113 : vector<1x128xf32>
    %123 = arith.addf %121, %122 : vector<1x128xf32>
    %124 = arith.mulf %103, %107 : vector<1x128xf32>
    %cst_17 = arith.constant 0.000000e+00 : f32
    %125 = vector.broadcast %cst_17 : f32 to vector<1x128xf32>
    %126 = arith.addf %125, %124 : vector<1x128xf32>
    %127 = arith.mulf %105, %111 : vector<1x128xf32>
    %128 = arith.addf %126, %127 : vector<1x128xf32>
    %129 = arith.mulf %103, %109 : vector<1x128xf32>
    %cst_18 = arith.constant 0.000000e+00 : f32
    %130 = vector.broadcast %cst_18 : f32 to vector<1x128xf32>
    %131 = arith.addf %130, %129 : vector<1x128xf32>
    %132 = arith.mulf %105, %113 : vector<1x128xf32>
    %133 = arith.addf %131, %132 : vector<1x128xf32>
    %134 = vector.extract_strided_slice %5 {offsets = [6, 0, 0, 0, 0], sizes = [1, 1, 1, 1, 128], strides = [1, 1, 1, 1, 1]} : vector<8x2x2x1x128xf32> to vector<1x1x1x1x128xf32>
    %135 = vector.shape_cast %134 : vector<1x1x1x1x128xf32> to vector<1x128xf32>
    %136 = vector.extract_strided_slice %5 {offsets = [6, 0, 1, 0, 0], sizes = [1, 1, 1, 1, 128], strides = [1, 1, 1, 1, 1]} : vector<8x2x2x1x128xf32> to vector<1x1x1x1x128xf32>
    %137 = vector.shape_cast %136 : vector<1x1x1x1x128xf32> to vector<1x128xf32>
    %138 = vector.extract_strided_slice %5 {offsets = [6, 1, 0, 0, 0], sizes = [1, 1, 1, 1, 128], strides = [1, 1, 1, 1, 1]} : vector<8x2x2x1x128xf32> to vector<1x1x1x1x128xf32>
    %139 = vector.shape_cast %138 : vector<1x1x1x1x128xf32> to vector<1x128xf32>
    %140 = vector.extract_strided_slice %5 {offsets = [6, 1, 1, 0, 0], sizes = [1, 1, 1, 1, 128], strides = [1, 1, 1, 1, 1]} : vector<8x2x2x1x128xf32> to vector<1x1x1x1x128xf32>
    %141 = vector.shape_cast %140 : vector<1x1x1x1x128xf32> to vector<1x128xf32>
    %142 = arith.mulf %118, %135 : vector<1x128xf32>
    %cst_19 = arith.constant 0.000000e+00 : f32
    %143 = vector.broadcast %cst_19 : f32 to vector<1x128xf32>
    %144 = arith.addf %143, %142 : vector<1x128xf32>
    %145 = arith.mulf %123, %139 : vector<1x128xf32>
    %146 = arith.addf %144, %145 : vector<1x128xf32>
    %147 = arith.mulf %118, %137 : vector<1x128xf32>
    %cst_20 = arith.constant 0.000000e+00 : f32
    %148 = vector.broadcast %cst_20 : f32 to vector<1x128xf32>
    %149 = arith.addf %148, %147 : vector<1x128xf32>
    %150 = arith.mulf %123, %141 : vector<1x128xf32>
    %151 = arith.addf %149, %150 : vector<1x128xf32>
    %152 = arith.mulf %128, %135 : vector<1x128xf32>
    %cst_21 = arith.constant 0.000000e+00 : f32
    %153 = vector.broadcast %cst_21 : f32 to vector<1x128xf32>
    %154 = arith.addf %153, %152 : vector<1x128xf32>
    %155 = arith.mulf %133, %139 : vector<1x128xf32>
    %156 = arith.addf %154, %155 : vector<1x128xf32>
    %157 = arith.mulf %128, %137 : vector<1x128xf32>
    %cst_22 = arith.constant 0.000000e+00 : f32
    %158 = vector.broadcast %cst_22 : f32 to vector<1x128xf32>
    %159 = arith.addf %158, %157 : vector<1x128xf32>
    %160 = arith.mulf %133, %141 : vector<1x128xf32>
    %161 = arith.addf %159, %160 : vector<1x128xf32>
    %162 = vector.extract_strided_slice %5 {offsets = [7, 0, 0, 0, 0], sizes = [1, 1, 1, 1, 128], strides = [1, 1, 1, 1, 1]} : vector<8x2x2x1x128xf32> to vector<1x1x1x1x128xf32>
    %163 = vector.shape_cast %162 : vector<1x1x1x1x128xf32> to vector<1x128xf32>
    %164 = vector.extract_strided_slice %5 {offsets = [7, 0, 1, 0, 0], sizes = [1, 1, 1, 1, 128], strides = [1, 1, 1, 1, 1]} : vector<8x2x2x1x128xf32> to vector<1x1x1x1x128xf32>
    %165 = vector.shape_cast %164 : vector<1x1x1x1x128xf32> to vector<1x128xf32>
    %166 = vector.extract_strided_slice %5 {offsets = [7, 1, 0, 0, 0], sizes = [1, 1, 1, 1, 128], strides = [1, 1, 1, 1, 1]} : vector<8x2x2x1x128xf32> to vector<1x1x1x1x128xf32>
    %167 = vector.shape_cast %166 : vector<1x1x1x1x128xf32> to vector<1x128xf32>
    %168 = vector.extract_strided_slice %5 {offsets = [7, 1, 1, 0, 0], sizes = [1, 1, 1, 1, 128], strides = [1, 1, 1, 1, 1]} : vector<8x2x2x1x128xf32> to vector<1x1x1x1x128xf32>
    %169 = vector.shape_cast %168 : vector<1x1x1x1x128xf32> to vector<1x128xf32>
    %170 = arith.mulf %146, %163 : vector<1x128xf32>
    %cst_23 = arith.constant 0.000000e+00 : f32
    %171 = vector.broadcast %cst_23 : f32 to vector<1x128xf32>
    %172 = arith.addf %171, %170 : vector<1x128xf32>
    %173 = arith.mulf %151, %167 : vector<1x128xf32>
    %174 = arith.addf %172, %173 : vector<1x128xf32>
    %175 = arith.mulf %146, %165 : vector<1x128xf32>
    %cst_24 = arith.constant 0.000000e+00 : f32
    %176 = vector.broadcast %cst_24 : f32 to vector<1x128xf32>
    %177 = arith.addf %176, %175 : vector<1x128xf32>
    %178 = arith.mulf %151, %169 : vector<1x128xf32>
    %179 = arith.addf %177, %178 : vector<1x128xf32>
    %180 = arith.mulf %156, %163 : vector<1x128xf32>
    %cst_25 = arith.constant 0.000000e+00 : f32
    %181 = vector.broadcast %cst_25 : f32 to vector<1x128xf32>
    %182 = arith.addf %181, %180 : vector<1x128xf32>
    %183 = arith.mulf %161, %167 : vector<1x128xf32>
    %184 = arith.addf %182, %183 : vector<1x128xf32>
    %185 = arith.mulf %156, %165 : vector<1x128xf32>
    %cst_26 = arith.constant 0.000000e+00 : f32
    %186 = vector.broadcast %cst_26 : f32 to vector<1x128xf32>
    %187 = arith.addf %186, %185 : vector<1x128xf32>
    %188 = arith.mulf %161, %169 : vector<1x128xf32>
    %189 = arith.addf %187, %188 : vector<1x128xf32>
    %190 = arith.mulf %82, %174 : vector<1x128xf32>
    %cst_27 = arith.constant 0.000000e+00 : f32
    %191 = vector.broadcast %cst_27 : f32 to vector<1x128xf32>
    %192 = arith.addf %191, %190 : vector<1x128xf32>
    %193 = arith.mulf %92, %179 : vector<1x128xf32>
    %194 = arith.addf %192, %193 : vector<1x128xf32>
    %195 = arith.mulf %82, %184 : vector<1x128xf32>
    %cst_28 = arith.constant 0.000000e+00 : f32
    %196 = vector.broadcast %cst_28 : f32 to vector<1x128xf32>
    %197 = arith.addf %196, %195 : vector<1x128xf32>
    %198 = arith.mulf %92, %189 : vector<1x128xf32>
    %199 = arith.addf %197, %198 : vector<1x128xf32>
    %200 = arith.mulf %87, %174 : vector<1x128xf32>
    %cst_29 = arith.constant 0.000000e+00 : f32
    %201 = vector.broadcast %cst_29 : f32 to vector<1x128xf32>
    %202 = arith.addf %201, %200 : vector<1x128xf32>
    %203 = arith.mulf %97, %179 : vector<1x128xf32>
    %204 = arith.addf %202, %203 : vector<1x128xf32>
    %205 = arith.mulf %87, %184 : vector<1x128xf32>
    %cst_30 = arith.constant 0.000000e+00 : f32
    %206 = vector.broadcast %cst_30 : f32 to vector<1x128xf32>
    %207 = arith.addf %206, %205 : vector<1x128xf32>
    %208 = arith.mulf %97, %189 : vector<1x128xf32>
    %209 = arith.addf %207, %208 : vector<1x128xf32>
    %210 = vector.shape_cast %194 : vector<1x128xf32> to vector<1x1x128xf32>
    %211 = vector.shape_cast %199 : vector<1x128xf32> to vector<1x1x128xf32>
    %212 = vector.shape_cast %204 : vector<1x128xf32> to vector<1x1x128xf32>
    %213 = vector.shape_cast %209 : vector<1x128xf32> to vector<1x1x128xf32>
    %214 = tpu.concatenate %210, %211, %212, %213 in 0 : vector<1x1x128xf32>, vector<1x1x128xf32>, vector<1x1x128xf32>, vector<1x1x128xf32> -> vector<4x1x128xf32>
    %215 = vector.shape_cast %214 : vector<4x1x128xf32> to vector<4x128xf32>
    %c0_31 = arith.constant 0 : index
    %c0_32 = arith.constant 0 : index
    %216 = vector.load %arg3[%c0_31, %c0_32] : memref<32x4xf32, #tpu.memory_space<vmem>>, vector<32x4xf32>
    %cst_33 = arith.constant dense<0.000000e+00> : vector<32x128xf32>
    %217 = tpu.matmul %216, %215, %cst_33 {dimension_numbers = #tpu.dot_dimension_numbers<[1], [0], [0], [1], [0, 0, 1, 1], [], []>} : vector<32x4xf32>, vector<4x128xf32>, vector<32x128xf32> -> vector<32x128xf32>
    %c0_34 = arith.constant 0 : index
    %c0_35 = arith.constant 0 : index
    %218 = vector.load %arg4[%c0_34, %c0_35] : memref<32x128xf32, #tpu.memory_space<vmem>>, vector<32x128xf32>
    tpu.vector_store %arg4[%c0_34, %c0_35], %217 {strides = array<i32>} : memref<32x128xf32, #tpu.memory_space<vmem>>, vector<32x128xf32>,
    return
  }
  func.func @transform_0(%arg0: i32) -> (i32, i32) {
    %c0_i32 = arith.constant 0 : i32
    %c0_i32_0 = arith.constant 0 : i32
    return %arg0, %c0_i32 : i32, i32
  }
  func.func @transform_1(%arg0: i32) -> (i32, i32) {
    %c0_i32 = arith.constant 0 : i32
    %c0_i32_0 = arith.constant 0 : i32
    %c0_i32_1 = arith.constant 0 : i32
    return %c0_i32, %c0_i32_0 : i32, i32
  }
  func.func @transform_2(%arg0: i32) -> (i32, i32) {
    %c0_i32 = arith.constant 0 : i32
    %c0_i32_0 = arith.constant 0 : i32
    %c0_i32_1 = arith.constant 0 : i32
    return %c0_i32, %c0_i32_0 : i32, i32
  }
  func.func @transform_3(%arg0: i32) -> (i32, i32) {
    %c0_i32 = arith.constant 0 : i32
    %c0_i32_0 = arith.constant 0 : i32
    return %c0_i32, %arg0 : i32, i32
  }
}

</mosaic_0001>

<bundles_post_ra>
// kernel: mps_linear_pallas.1
= control target key start
LH: loop header
LB: loop body
LE: loop exit
PB: predicated region body
PF: predicated region fallthrough
CT: control target
= control target key end

     0   :  { %vm34_vm0 = vcmask 130048   ;;  %vm397_vm1 = vcmask 31744   ;;  %vm389_vm2 = vcmask 1041409   ;;  %vm392_vm3 = vcmask 1042434   ;;  %s768_s0 = inlined_call_operand.vmem [shape: f32[128,16], index: 0, kind: input, shape index: {}]   ;;  %s769_s1 = inlined_call_operand.vmem [shape: f32[32,16], index: 1, kind: input, shape index: {}]   ;;  %s770_s2 = inlined_call_operand.vmem [shape: f32[32,4], index: 2, kind: input, shape index: {}]   ;;  %s771_s3 = inlined_call_operand.vmem [shape: f32[32,128], index: 3, kind: output, shape index: {}]  }
   0x1   :  { %v33_v0 = vld [vmem:[%s768_s0 + $0x78] sm:$0xff]  ;;  %v32_v1 = vld [vmem:[%s768_s0 + $0x70] sm:$0xff]  ;;  %v31_v2 = vld [vmem:[%s768_s0 + $0x68] sm:$0xff]  ;;  %vm395_vm4 = vcmask 1043459   ;;  %vm410_vm5 = vcmask 1043456  }
   0x2   :  { %556 = vmatprep.subr.msk.mxu0 %vm34_vm0, %v33_v0  ;;  %v14_v3 = vld [vmem:[%s769_s1] sm:$0xff]  ;;  %v29_v5 = vld [vmem:[%s768_s0 + $0x58] sm:$0xff]  ;;  %v28_v6 = vld [vmem:[%s768_s0 + $0x50] sm:$0xff] }
   0x3   :  { %557 = vmatpush3.xpose.msk.msra.mxu0 %vm34_vm0, %v33_v0  ;;  %588 = vmatprep.mubr.msk.f32.mxu0 %vm34_vm0, %v14_v3  ;;  %v30_v4 = vld [vmem:[%s768_s0 + $0x60] sm:$0xff]  ;;  %v27_v7 = vld [vmem:[%s768_s0 + $0x48] sm:$0xff]  ;;  %v25_v9 = vld [vmem:[%s768_s0 + $0x38] sm:$0xff] }
   0x4   :  { %558 = vmatprep.subr.msk.mxu0 %vm34_vm0, %v32_v1  ;;  %v26_v8 = vld [vmem:[%s768_s0 + $0x40] sm:$0xff]  ;;  %v24_v10 = vld [vmem:[%s768_s0 + $0x30] sm:$0xff]  ;;  %v23_v11 = vld [vmem:[%s768_s0 + $0x28] sm:$0xff] }
   0x5   :  { %v22_v12 = vld [vmem:[%s768_s0 + $0x20] sm:$0xff]  ;;  %v21_v13 = vld [vmem:[%s768_s0 + $0x18] sm:$0xff]  ;;  %v20_v14 = vld [vmem:[%s768_s0 + $0x10] sm:$0xff] }
   0x6   :  { %v19_v15 = vld [vmem:[%s768_s0 + $0x8] sm:$0xff]  ;;  %v18_v16 = vld [vmem:[%s768_s0] sm:$0xff]  ;;  %v16_v18 = vld [vmem:[%s769_s1 + $0x10] sm:$0xff] }
   0x7   :  { %559 = vmatpush3.xpose.msk.msra.mxu0 %vm34_vm0, %v32_v1  ;;  %v15_v17 = vld [vmem:[%s769_s1 + $0x8] sm:$0xff]  ;;  %v17_v19 = vld [vmem:[%s769_s1 + $0x18] sm:$0xff]  ;;  %v380_v20 = vld [vmem:[%s770_s2] sm:$0xff] }
   0x8   :  { %560 = vmatprep.subr.msk.mxu0 %vm34_vm0, %v31_v2  ;;  %596 = vmatprep.mubr.msk.f32.mxu1 %vm397_vm1, %v380_v20 }
   0xb   :  { %561 = vmatpush3.xpose.msk.msra.mxu0 %vm34_vm0, %v31_v2 }
   0xc   :  { %562 = vmatprep.subr.msk.mxu0 %vm34_vm0, %v30_v4 }
   0xf   :  { %563 = vmatpush3.xpose.msk.msra.mxu0 %vm34_vm0, %v30_v4 }
  0x10   :  { %564 = vmatprep.subr.msk.mxu0 %vm34_vm0, %v29_v5 }
  0x13   :  { %565 = vmatpush3.xpose.msk.msra.mxu0 %vm34_vm0, %v29_v5 }
  0x14   :  { %566 = vmatprep.subr.msk.mxu0 %vm34_vm0, %v28_v6 }
  0x17   :  { %567 = vmatpush3.xpose.msk.msra.mxu0 %vm34_vm0, %v28_v6 }
  0x18   :  { %568 = vmatprep.subr.msk.mxu0 %vm34_vm0, %v27_v7 }
  0x1b   :  { %569 = vmatpush3.xpose.msk.msra.mxu0 %vm34_vm0, %v27_v7 }
  0x1c   :  { %570 = vmatprep.subr.msk.mxu0 %vm34_vm0, %v26_v8 }
  0x1f   :  { %571 = vmatpush3.xpose.msk.msra.mxu0 %vm34_vm0, %v26_v8 }
  0x20   :  { %572 = vmatprep.subr.msk.mxu0 %vm34_vm0, %v25_v9 }
  0x23   :  { %573 = vmatpush3.xpose.msk.msra.mxu0 %vm34_vm0, %v25_v9 }
  0x24   :  { %574 = vmatprep.subr.msk.mxu0 %vm34_vm0, %v24_v10 }
  0x27   :  { %575 = vmatpush3.xpose.msk.msra.mxu0 %vm34_vm0, %v24_v10 }
  0x28   :  { %576 = vmatprep.subr.msk.mxu0 %vm34_vm0, %v23_v11 }
  0x2b   :  { %577 = vmatpush3.xpose.msk.msra.mxu0 %vm34_vm0, %v23_v11 }
  0x2c   :  { %578 = vmatprep.subr.msk.mxu0 %vm34_vm0, %v22_v12 }
  0x2f   :  { %579 = vmatpush3.xpose.msk.msra.mxu0 %vm34_vm0, %v22_v12 }
  0x30   :  { %580 = vmatprep.subr.msk.mxu0 %vm34_vm0, %v21_v13 }
  0x33   :  { %581 = vmatpush3.xpose.msk.msra.mxu0 %vm34_vm0, %v21_v13 }
  0x34   :  { %582 = vmatprep.subr.msk.mxu0 %vm34_vm0, %v20_v14 }
  0x37   :  { %583 = vmatpush3.xpose.msk.msra.mxu0 %vm34_vm0, %v20_v14 }
  0x38   :  { %584 = vmatprep.subr.msk.mxu0 %vm34_vm0, %v19_v15 }
  0x3b   :  { %585 = vmatpush3.xpose.msk.msra.mxu0 %vm34_vm0, %v19_v15 }
  0x3c   :  { %586 = vmatprep.subr.msk.mxu0 %vm34_vm0, %v18_v16 }
  0x3f   :  { %587 = vmatpush3.xpose.msk.msra.mxu0 %vm34_vm0, %v18_v16 }
  0x42   :  { %589 = vmatmul.mubr.msk.f32.vlgmr.msra.gmra.mxu0 %vm34_vm0, %v15_v17 }
  0x43   :  { %591 = vmatprep.mubr.msk.f32.mxu0 %vm34_vm0, %v16_v18 }
  0x46   :  { %592 = vmatmul.mubr.msk.f32.gmra.mxu0 %vm34_vm0, %v17_v19 }
 0x102   :  { %v722_v21 = vpop.f32.mrf.mxu0 }
 0x103   :  { %v219_v34 = vrot.slane %v722_v21, 2  ;;  %v223_v35 = vrot.slane %v722_v21, 1  ;;  %v227_v36 = vrot.slane %v722_v21, 3  ;;  %v231_v48 = vrot.slane %v722_v21, 6 }
 0x104   :  { %v161_v22 = vpop.f32.mrf.mxu0  ;;  %v237_v50 = vrot.slane %v722_v21, 7  ;;  %v243_v4 = vrot.slane %v722_v21, 4  ;;  %v249_v5 = vrot.slane %v722_v21, 5 }
 0x105   :  { %v181_v23 = vrot.slane %v161_v22, 4  ;;  %v185_v24 = vrot.slane %v161_v22, 5  ;;  %v193_v25 = vrot.slane %v161_v22, 6  ;;  %v200_v27 = vrot.slane %v161_v22, 2 }
 0x106   :  { %v724_v26 = vpop.f32.mrf.mxu0  ;;  %v204_v28 = vrot.slane %v161_v22, 3 }
 0x107   :  { %v183_v29 = vmul.f32 %v181_v23, %v161_v22  ;;  %v187_v30 = vmul.f32 %v185_v24, %v161_v22  ;;  %v195_v31 = vmul.f32 %v193_v25, %v161_v22  ;;  %v202_v41 = vmul.f32 %v200_v27, %v161_v22 }
 0x108   :  { %v171_v32 = vpop.f32.mrf.mxu0  ;;  %v206_v33 = vmul.f32 %v204_v28, %v161_v22  ;;  %v302_v6 = vrot.slane %v724_v26, 2  ;;  %v306_v9 = vrot.slane %v724_v26, 1  ;;  %v310_v10 = vrot.slane %v724_v26, 3 }
 0x109   :  { %v189_v37 = vrot.slane %v187_v30, 1  ;;  %v197_v38 = vrot.slane %v195_v31, 1  ;;  %v213_v39 = vrot.slane %v183_v29, 1  ;;  %v264_v40 = vrot.slane %v171_v32, 4 }
 0x10a   :  { %v208_v42 = vrot.slane %v206_v33, 1  ;;  %v268_v43 = vrot.slane %v171_v32, 5  ;;  %v276_v44 = vrot.slane %v171_v32, 6  ;;  %v283_v56 = vrot.slane %v171_v32, 2 }
 0x10b   :  { %v191_v45 = vadd.f32 %v189_v37, %v183_v29  ;;  %v199_v46 = vadd.f32 %v197_v38, %v187_v30  ;;  %v215_v47 = vadd.f32 %v213_v39, %v206_v33  ;;  %v266_v55 = vmul.f32 %v264_v40, %v171_v32 }
 0x10c   :  { %v210_v49 = vadd.f32 %v208_v42, %v202_v41  ;;  %v270_v51 = vmul.f32 %v268_v43, %v171_v32  ;;  %v278_v52 = vmul.f32 %v276_v44, %v171_v32  ;;  %v287_v3 = vrot.slane %v171_v32, 3 }
 0x10d   :  { %v216_v53 = vmul.f32 %v722_v21, %v191_v45  ;;  %v221_v54 = vmul.f32 %v219_v34, %v199_v46  ;;  %v235_v58 = vmul.f32 %v722_v21, %v215_v47  ;;  %v241_v60 = vmul.f32 %v223_v35, %v215_v47 }
 0x10e   :  { %v233_v57 = vmul.f32 %v231_v48, %v210_v49  ;;  %v239_v59 = vmul.f32 %v237_v50, %v210_v49  ;;  %v225_v61 = vmul.f32 %v223_v35, %v191_v45  ;;  %v229_v62 = vmul.f32 %v227_v36, %v199_v46 }
 0x10f   :  { %v272_v63 = vrot.slane %v270_v51, 1  ;;  %v280_v0 = vrot.slane %v278_v52, 1  ;;  %v285_v7 = vmul.f32 %v283_v56, %v171_v32  ;;  %v296_v8 = vrot.slane %v266_v55, 1 }
 0x110   :  { %v236_v1 = vadd.f32 %v235_v58, %v233_v57  ;;  %v242_v2 = vadd.f32 %v241_v60, %v239_v59  ;;  %v222_v11 = vadd.f32 %v221_v54, %v216_v53  ;;  %v230_v12 = vadd.f32 %v229_v62, %v225_v61 }
 0x111   :  { %v274_v13 = vadd.f32 %v272_v63, %v266_v55  ;;  %v282_v14 = vadd.f32 %v280_v0, %v270_v51  ;;  %v289_v18 = vmul.f32 %v287_v3, %v171_v32  ;;  %v314_v25 = vrot.slane %v724_v26, 6 }
 0x112   :  { %v255_v15 = vmul.f32 %v236_v1, %v219_v34  ;;  %v257_v16 = vmul.f32 %v243_v4, %v242_v2  ;;  %v259_v17 = vmul.f32 %v236_v1, %v227_v36  ;;  %v320_v27 = vrot.slane %v724_v26, 7 }
 0x113   :  { %v299_v19 = vmul.f32 %v724_v26, %v274_v13  ;;  %v304_v20 = vmul.f32 %v302_v6, %v282_v14  ;;  %v308_v21 = vmul.f32 %v306_v9, %v274_v13  ;;  %v312_v22 = vmul.f32 %v310_v10, %v282_v14 }
 0x114   :  { %v291_v23 = vrot.slane %v289_v18, 1  ;;  %v298_v24 = vadd.f32 %v296_v8, %v289_v18  ;;  %v326_v30 = vrot.slane %v724_v26, 4  ;;  %v332_v31 = vrot.slane %v724_v26, 5 }
 0x115   :  { %v305_v28 = vadd.f32 %v304_v20, %v299_v19  ;;  %v313_v29 = vadd.f32 %v312_v22, %v308_v21  ;;  %v261_v33 = vmul.f32 %v249_v5, %v242_v2  ;;  %v251_v42 = vmul.f32 %v249_v5, %v222_v11  ;;  %v381_v19 = vld [vmem:[%s770_s2 + $0x8] sm:$0xff]  ;;  %v382_v20 = vld [vmem:[%s770_s2 + $0x10] sm:$0xff]  ;;  %v383_v21 = vld [vmem:[%s770_s2 + $0x18] sm:$0xff] }
 0x116   :  { %v293_v34 = vadd.f32 %v291_v23, %v285_v7  ;;  %v318_v32 = vmul.f32 %v724_v26, %v298_v24  ;;  %v324_v35 = vmul.f32 %v306_v9, %v298_v24  ;;  %v253_v43 = vmul.f32 %v237_v50, %v230_v12 }
 0x117   :  { %v328_v36 = vmul.f32 %v326_v30, %v305_v28  ;;  %v330_v37 = vmul.f32 %v314_v25, %v313_v29  ;;  %v334_v38 = vmul.f32 %v332_v31, %v305_v28  ;;  %v336_v39 = vmul.f32 %v320_v27, %v313_v29 }
 0x118   :  { %v316_v40 = vmul.f32 %v314_v25, %v293_v34  ;;  %v322_v41 = vmul.f32 %v320_v27, %v293_v34  ;;  %v245_v45 = vmul.f32 %v243_v4, %v222_v11  ;;  %v247_v46 = vmul.f32 %v231_v48, %v230_v12 }
 0x119   :  { %v337_v44 = vadd.f32 %v336_v39, %v334_v38  ;;  %v258_v51 = vadd.f32 %v257_v16, %v255_v15  ;;  %v262_v52 = vadd.f32 %v261_v33, %v259_v17  ;;  %v331_v53 = vadd.f32 %v330_v37, %v328_v36 }
 0x11a   :  { %v319_v47 = vadd.f32 %v318_v32, %v316_v40  ;;  %v325_v49 = vadd.f32 %v324_v35, %v322_v41  ;;  %v254_v58 = vadd.f32 %v253_v43, %v251_v42  ;;  %v248_v63 = vadd.f32 %v247_v46, %v245_v45 }
 0x11b   :  { %v349_v54 = vrot.slane %v337_v44, 6 }
 0x11c   :  { %v338_v55 = vmul.f32 %v319_v47, %v302_v6  ;;  %v340_v26 = vmul.f32 %v326_v30, %v325_v49  ;;  %v342_v56 = vmul.f32 %v319_v47, %v310_v10  ;;  %v344_v57 = vmul.f32 %v332_v31, %v325_v49 }
 0x11d   :  { %v351_v59 = vmul.f32 %v349_v54, %v258_v51  ;;  %v368_v60 = vmul.f32 %v349_v54, %v262_v52  ;;  %v366_v50 = vmul.f32 %v331_v53, %v254_v58  ;;  %v346_v4 = vmul.f32 %v331_v53, %v248_v63 }
 0x11e   :  { %v341_v61 = vadd.f32 %v340_v26, %v338_v55  ;;  %v345_v62 = vadd.f32 %v344_v57, %v342_v56 }
 0x11f   :  { %v370_v0 = vrot.slane %v368_v60, 2  ;;  %v353_v1 = vrot.slane %v351_v59, 2 }
 0x120   :  { %v357_v48 = vrot.slane %v341_v61, 2  ;;  %v361_v2 = vmul.f32 %v345_v62, %v258_v51  ;;  %v375_v3 = vmul.f32 %v345_v62, %v262_v52 }
 0x121   :  { %v372_v5 = vadd.f32 %v370_v0, %v366_v50  ;;  %v355_v10 = vadd.f32 %v353_v1, %v346_v4 }
 0x122   :  { %v359_v7 = vmul.f32 %v357_v48, %v248_v63  ;;  %v363_v8 = vrot.slane %v361_v2, 2  ;;  %v373_v6 = vmul.f32 %v357_v48, %v254_v58  ;;  %v377_v9 = vrot.slane %v375_v3, 2 }
 0x123   :  { %v391_v13 = vrot.slane %v372_v5, 6 }
 0x124   :  { %v365_v11 = vadd.f32 %v363_v8, %v359_v7  ;;  %v379_v12 = vadd.f32 %v377_v9, %v373_v6 }
 0x126   :  { %v388_v14 = vrot.slane %v365_v11, 7  ;;  %v394_v16 = vrot.slane %v379_v12, 5 }
 0x128   :  { %v390_v15 = vsel %vm389_vm2, %v388_v14, %v355_v10 }
 0x129   :  { %v393_v17 = vsel %vm392_vm3, %v391_v13, %v390_v15 }
 0x12a   :  { %v396_v18 = vsel %vm395_vm4, %v394_v16, %v393_v17 }
 0x12b   :  { %594 = vmatprep.subr.msk.mxu1 %vm410_vm5, %v396_v18 }
 0x12c   :  { %595 = vmatpush3.msk.msra.mxu1 %vm410_vm5, %v396_v18 }
 0x12d   :  { %597 = vmatmul.mubr.msk.f32.vlgmr.msra.gmra.mxu1 %vm397_vm1, %v381_v19 }
 0x12e   :  { %599 = vmatprep.mubr.msk.f32.mxu1 %vm397_vm1, %v382_v20 }
 0x131   :  { %600 = vmatmul.mubr.msk.f32.gmra.mxu1 %vm397_vm1, %v383_v21 }
 0x1ed   :  { %v598_v22 = vpop.f32.mrf.mxu1 }
 0x1ee   :  { %499 = vst [vmem:[%s771_s3 + $0x8] sm:$0xff] %v598_v22 }
 0x1ef   :  { %v479_v23 = vpop.f32.mrf.mxu1 }
 0x1f0   :  { %498 = vst [vmem:[%s771_s3] sm:$0xff] %v479_v23 }
 0x1f1   :  { %v601_v24 = vpop.f32.mrf.mxu1 }
 0x1f2   :  { %501 = vst [vmem:[%s771_s3 + $0x18] sm:$0xff] %v601_v24 }
 0x1f3   :  { %v489_v25 = vpop.f32.mrf.mxu1 }
 0x1f4   :  { %500 = vst [vmem:[%s771_s3 + $0x10] sm:$0xff] %v489_v25 }

</bundles_post_ra>
